<compile_context>
chip_gen: v7x
topology: tpu7x:2x2x1
jax: 0.10.0
libtpu: 0.0.40
codegen_flags: <defaults>
</compile_context>

<pallas_src>
import math

import jax
import jax.numpy as jnp
from jax import lax
from jax.experimental import pallas as pl
from jax.experimental.pallas import tpu as pltpu

# Small example sizes implied by the module
LSTM = 32                 # config['lstm_size']
IN_DIM = 2 * LSTM         # lstm_size * 2
R = 8                     # num_rounds
B = 2                     # batch


def pair_kernel(x_ref, w_ref, aux_ref, out_ref):
    """Single invocation (grid = ()).

    x_ref  : (B*R, 2*IN_DIM)  row b*R+t = [hist[b,t] | ques[b,t]] lane-packed
    w_ref  : (2*IN_DIM, 4*D)  block-diag fused GatedTrans weights
                              [[wyh|wgh|  0 |  0 ],
                               [  0 |  0 |wyq|wgq]]
    aux_ref: (8, 4*D)  row 0 = fused bias [byh|bgh|byq|bgq]
                       row 1 lanes[:D] = vh = watt0*(W1[:D]@W2)
                       row 2 lanes[:D] = vq = watt0*(W1[D:]@W2)
                       row 3 lane 0 = watt1, lane 1 = watt0*(b1@W2+b2)+batt
    out_ref: (B*R, R)  one-hot Gumbel-argmax rows (reshaped to (B,R,R) outside)
    """
    f32 = jnp.float32
    n = x_ref.shape[0]                 # B*R
    r = out_ref.shape[1]               # num_rounds
    nb = n // r                        # batch
    d = w_ref.shape[1] // 4            # lstm_size

    # ---- fused GatedTrans for both streams: one lane-dense MXU pass ----
    # (Dropout == identity in eval mode.)
    y = jnp.dot(x_ref[...], w_ref[...], preferred_element_type=f32) + aux_ref[0:1, :]
    h_e = jnp.tanh(y[:, 0:d]) * jax.nn.sigmoid(y[:, d:2 * d])               # (n, D) row = b*R + j
    q_e = jnp.tanh(y[:, 2 * d:3 * d]) * jax.nn.sigmoid(y[:, 3 * d:4 * d])   # (n, D) row = b*R + i

    vh = aux_ref[1:2, 0:d]             # (1, D)
    vq = aux_ref[2:3, 0:d]             # (1, D)
    watt1 = aux_ref[3:4, 0:1]          # (1, 1)  delta_t weight
    const = aux_ref[3:4, 1:2]          # (1, 1)  folded bias terms

    # ques-side score (i stays on sublanes): VPU multiply + lane reduction
    sq = jnp.sum(q_e * vq, axis=-1, keepdims=True)                          # (n, 1)
    # hist-side score must land on lanes (j is the output lane axis):
    # one tiny transposed matmul relayouts it directly to (1, n).
    sh = jnp.dot(vh, h_e.T, preferred_element_type=f32)                     # (1, n)

    # causal mask + delta_t + folded constants, computed once at (R, R)
    row = lax.broadcasted_iota(jnp.int32, (r, r), 0)
    col = lax.broadcasted_iota(jnp.int32, (r, r), 1)
    base_rr = jnp.where(col <= row,
                        watt1 * (row - col + 1).astype(f32) + const,
                        -jnp.inf)                                           # (r, r)

    # stacked masked logits (B*R, R); static concat over the tiny batch,
    # the reduce/compare/store chain below runs once for all batches.
    masked = jnp.concatenate(
        [sq[bb * r:(bb + 1) * r, :]
         + jnp.broadcast_to(sh[:, bb * r:(bb + 1) * r], (r, r))
         + base_rr
         for bb in range(nb)], axis=0)                                      # (n, r)

    # ---- GumbelSoftmax (eval path): one-hot argmax over the causal prefix ----
    # TODO(synk): training-mode Gumbel noise sampling omitted (eval-only path).
    col_n = lax.broadcasted_iota(jnp.int32, (n, r), 1)
    mx = jnp.max(masked, axis=-1, keepdims=True)
    eq = masked == mx
    first = jnp.min(jnp.where(eq, col_n, r), axis=-1, keepdims=True)        # first-max tie rule
    out_ref[...] = (col_n == first).astype(out_ref.dtype)


def fuse_params(params):
    """Parameter-only fusion. Call ONCE per set of weights and reuse the result
    (depends only on params, not on hist/ques), so no per-call prep HLO."""
    f32 = jnp.float32
    d = params["wyh"].shape[1]          # lstm_size
    in_dim = params["wyh"].shape[0]     # 2 * lstm_size

    # block-diagonal fused GatedTrans weight: (2*in_dim, 4*d) = (128, 128)
    top = jnp.concatenate([params["wyh"], params["wgh"]], axis=1)           # (in_dim, 2d)
    bot = jnp.concatenate([params["wyq"], params["wgq"]], axis=1)           # (in_dim, 2d)
    zed = jnp.zeros((in_dim, 2 * d), f32)
    w_fused = jnp.concatenate(
        [jnp.concatenate([top, zed], axis=1),
         jnp.concatenate([zed, bot], axis=1)], axis=0)                      # (2*in_dim, 4d)

    b_fused = jnp.concatenate([params["byh"], params["bgh"],
                               params["byq"], params["bgq"]], axis=1)       # (1, 4d)

    # collapse the pairwise MLP (no nonlinearity between its two Linears) and
    # fold att = Linear(2->1) into the score vectors / the additive constant.
    watt0 = params["watt"][0, 0]
    watt1 = params["watt"][0, 1]
    vh = (params["w1"][:d, :] @ params["w2"])[:, 0] * watt0                 # (d,)  hist side
    vq = (params["w1"][d:, :] @ params["w2"])[:, 0] * watt0                 # (d,)  ques side
    const = watt0 * (params["b1"] @ params["w2"] + params["b2"])[0, 0] + params["batt"][0, 0]

    aux = jnp.zeros((8, 4 * d), f32)
    aux = aux.at[0, :].set(b_fused[0])
    aux = aux.at[1, :d].set(vh)
    aux = aux.at[2, :d].set(vq)
    aux = aux.at[3, 0].set(watt1)
    aux = aux.at[3, 1].set(const)
    return w_fused, aux


@jax.jit
def pair_module(hist, ques, w_fused, aux):
    b, r, in_dim = hist.shape
    # lane-pack the two streams: (B*R, 2*IN_DIM) = (16, 128), lane-dense DMA.
    x = jnp.concatenate([hist.reshape(b * r, in_dim),
                         ques.reshape(b * r, in_dim)], axis=1)

    vmem = pl.BlockSpec(memory_space=pltpu.MemorySpace.VMEM)
    # Footprint ~70 KB total -> single grid-less invocation, everything in VMEM.
    # (On v7x, add a parallel batch grid axis only if B grows well beyond toy size.)
    out2d = pl.pallas_call(
        pair_kernel,
        out_shape=jax.ShapeDtypeStruct((b * r, r), jnp.float32),
        in_specs=[vmem, vmem, vmem],
        out_specs=vmem,
    )(x, w_fused, aux)
    return out2d.reshape(b, r, r)


def _kaiming_uniform(key, in_dim, out_dim, shape=None):
    bound = math.sqrt(6.0 / in_dim)
    shape = (in_dim, out_dim) if shape is None else shape
    return jax.random.uniform(key, shape, jnp.float32, -bound, bound)


def init_params(key):
    ks = jax.random.split(key, 8)
    return {
        "wyh": _kaiming_uniform(ks[0], IN_DIM, LSTM),
        "byh": jnp.zeros((1, LSTM), jnp.float32),
        "wgh": _kaiming_uniform(ks[1], IN_DIM, LSTM),
        "bgh": jnp.zeros((1, LSTM), jnp.float32),
        "wyq": _kaiming_uniform(ks[2], IN_DIM, LSTM),
        "byq": jnp.zeros((1, LSTM), jnp.float32),
        "wgq": _kaiming_uniform(ks[3], IN_DIM, LSTM),
        "bgq": jnp.zeros((1, LSTM), jnp.float32),
        "w1": _kaiming_uniform(ks[4], IN_DIM, LSTM),
        "b1": jnp.zeros((1, LSTM), jnp.float32),
        "w2": _kaiming_uniform(ks[5], LSTM, 1),
        "b2": jnp.zeros((1, 1), jnp.float32),
        "watt": _kaiming_uniform(ks[6], 2, 1, shape=(1, 2)),   # torch [out=1, in=2] layout
        "batt": jnp.zeros((1, 1), jnp.float32),
    }


def reference(hist, ques, p):
    """Pure-JAX reference mirroring the torch forward (eval mode, unfused)."""
    def gated(x, wy, by, wg, bg):
        return jnp.tanh(x @ wy + by) * jax.nn.sigmoid(x @ wg + bg)

    b, r, _ = ques.shape
    h_e = gated(hist, p["wyh"], p["byh"], p["wgh"], p["bgh"])       # (B,R,D)
    q_e = gated(ques, p["wyq"], p["byq"], p["wgq"], p["bgq"])       # (B,R,D)
    h_b = jnp.broadcast_to(h_e[:, None, :, :], (b, r, r, h_e.shape[-1]))
    q_b = jnp.broadcast_to(q_e[:, :, None, :], (b, r, r, q_e.shape[-1]))
    att = jnp.concatenate([h_b, q_b], axis=-1)
    s1 = att @ p["w1"] + p["b1"]
    score = (s1 @ p["w2"] + p["b2"])[..., 0]                        # (B,R,R)
    row = jnp.arange(r)[:, None]
    col = jnp.arange(r)[None, :]
    delta = jnp.where(col <= row, (row - col + 1).astype(jnp.float32), 0.0)
    logits = score * p["watt"][0, 0] + delta * p["watt"][0, 1] + p["batt"][0, 0]
    masked = jnp.where(col <= row, logits, -jnp.inf)
    idx = jnp.argmax(masked, axis=-1)
    return jax.nn.one_hot(idx, r, dtype=jnp.float32)


if __name__ == "__main__":
    key = jax.random.PRNGKey(0)
    k_hist, k_ques, k_params = jax.random.split(key, 3)
    hist = jax.random.normal(k_hist, (B, R, IN_DIM), jnp.float32)
    ques = jax.random.normal(k_ques, (B, R, IN_DIM), jnp.float32)
    params = init_params(k_params)

    # Parameter fusion hoisted out of the per-call path (computed once, reused).
    w_fused, aux = jax.block_until_ready(fuse_params(params))

    out = pair_module(hist, ques, w_fused, aux)
    out = jax.block_until_ready(out)

    ref = reference(hist, ques, params)
    assert out.shape == (B, R, R)
    assert jnp.allclose(out, ref), "Pallas kernel does not match JAX reference"
    print("KERNEL_OK")
</pallas_src>

<mosaic_0001>
module attributes {stable_mosaic.version = 11 : i64} {
  func.func @pair_kernel(%arg0: memref<16x128xf32, #tpu.memory_space<vmem>>, %arg1: memref<128x128xf32, #tpu.memory_space<vmem>>, %arg2: memref<8x128xf32, #tpu.memory_space<vmem>>, %arg3: memref<16x8xf32, #tpu.memory_space<vmem>>) attributes {dimension_semantics = [], scalar_prefetch = 0 : i64, scratch_operands = 0 : i64, tpu.core_type = #tpu.core_type<tc>} {
    %c0 = arith.constant 0 : index
    %c0_0 = arith.constant 0 : index
    %0 = vector.load %arg0[%c0, %c0_0] : memref<16x128xf32, #tpu.memory_space<vmem>>, vector<16x128xf32>
    %c0_1 = arith.constant 0 : index
    %c0_2 = arith.constant 0 : index
    %1 = vector.load %arg1[%c0_1, %c0_2] : memref<128x128xf32, #tpu.memory_space<vmem>>, vector<128x128xf32>
    %cst = arith.constant dense<0.000000e+00> : vector<16x128xf32>
    %2 = tpu.matmul %0, %1, %cst {dimension_numbers = #tpu.dot_dimension_numbers<[1], [0], [0], [1], [0, 0, 1, 1], [], []>} : vector<16x128xf32>, vector<128x128xf32>, vector<16x128xf32> -> vector<16x128xf32>
    %c0_3 = arith.constant 0 : index
    %c0_4 = arith.constant 0 : index
    %3 = vector.load %arg2[%c0_3, %c0_4] : memref<8x128xf32, #tpu.memory_space<vmem>>, vector<1x128xf32>
    %4 = vector.broadcast %3 : vector<1x128xf32> to vector<16x128xf32>
    %5 = arith.addf %2, %4 : vector<16x128xf32>
    %6 = vector.extract_strided_slice %5 {offsets = [0, 0], sizes = [16, 32], strides = [1, 1]} : vector<16x128xf32> to vector<16x32xf32>
    %7 = math.tanh %6 : vector<16x32xf32>
    %8 = vector.extract_strided_slice %5 {offsets = [0, 32], sizes = [16, 32], strides = [1, 1]} : vector<16x128xf32> to vector<16x32xf32>
    %9 = arith.negf %8 : vector<16x32xf32>
    %10 = math.exp %9 : vector<16x32xf32>
    %cst_5 = arith.constant 1.000000e+00 : f32
    %11 = vector.broadcast %cst_5 : f32 to vector<16x32xf32>
    %12 = arith.addf %11, %10 : vector<16x32xf32>
    %13 = arith.divf %11, %12 : vector<16x32xf32>
    %14 = arith.mulf %7, %13 : vector<16x32xf32>
    %15 = vector.extract_strided_slice %5 {offsets = [0, 64], sizes = [16, 32], strides = [1, 1]} : vector<16x128xf32> to vector<16x32xf32>
    %16 = math.tanh %15 : vector<16x32xf32>
    %17 = vector.extract_strided_slice %5 {offsets = [0, 96], sizes = [16, 32], strides = [1, 1]} : vector<16x128xf32> to vector<16x32xf32>
    %18 = arith.negf %17 : vector<16x32xf32>
    %19 = math.exp %18 : vector<16x32xf32>
    %cst_6 = arith.constant 1.000000e+00 : f32
    %20 = vector.broadcast %cst_6 : f32 to vector<16x32xf32>
    %21 = arith.addf %20, %19 : vector<16x32xf32>
    %22 = arith.divf %20, %21 : vector<16x32xf32>
    %23 = arith.mulf %16, %22 : vector<16x32xf32>
    %c1 = arith.constant 1 : index
    %c0_7 = arith.constant 0 : index
    %24 = vector.load %arg2[%c1, %c0_7] : memref<8x128xf32, #tpu.memory_space<vmem>>, vector<1x32xf32>
    %c2 = arith.constant 2 : index
    %c0_8 = arith.constant 0 : index
    %25 = vector.load %arg2[%c2, %c0_8] : memref<8x128xf32, #tpu.memory_space<vmem>>, vector<1x32xf32>
    %c3 = arith.constant 3 : index
    %c0_9 = arith.constant 0 : index
    %26 = vector.load %arg2[%c3, %c0_9] : memref<8x128xf32, #tpu.memory_space<vmem>>, vector<1x1xf32>
    %c3_10 = arith.constant 3 : index
    %c1_11 = arith.constant 1 : index
    %27 = vector.load %arg2[%c3_10, %c1_11] : memref<8x128xf32, #tpu.memory_space<vmem>>, vector<1x1xf32>
    %28 = vector.broadcast %25 : vector<1x32xf32> to vector<16x32xf32>
    %29 = arith.mulf %23, %28 : vector<16x32xf32>
    %cst_12 = arith.constant dense<0.000000e+00> : vector<16xf32>
    %30 = vector.multi_reduction <add>, %29, %cst_12 [1] : vector<16x32xf32> to vector<16xf32>
    %31 = vector.shape_cast %30 : vector<16xf32> to vector<16x1xf32>
    %32 = tpu.transpose %14, [1, 0] : vector<16x32xf32> -> vector<32x16xf32>
    %cst_13 = arith.constant dense<0.000000e+00> : vector<1x16xf32>
    %33 = tpu.matmul %24, %32, %cst_13 {dimension_numbers = #tpu.dot_dimension_numbers<[1], [0], [0], [1], [0, 0, 1, 1], [], []>} : vector<1x32xf32>, vector<32x16xf32>, vector<1x16xf32> -> vector<1x16xf32>
    %34 = tpu.iota {dimensions = array<i32: 0>} : vector<8x8xi32>
    %35 = tpu.iota {dimensions = array<i32: 1>} : vector<8x8xi32>
    %36 = arith.cmpi sle, %35, %34 : vector<8x8xi32>
    %37 = arith.subi %34, %35 : vector<8x8xi32>
    %c1_i32 = arith.constant 1 : i32
    %38 = vector.broadcast %c1_i32 : i32 to vector<8x8xi32>
    %39 = arith.addi %37, %38 : vector<8x8xi32>
    %40 = arith.sitofp %39 : vector<8x8xi32> to vector<8x8xf32>
    %41 = vector.broadcast %26 : vector<1x1xf32> to vector<8x8xf32>
    %42 = arith.mulf %41, %40 : vector<8x8xf32>
    %43 = vector.broadcast %27 : vector<1x1xf32> to vector<8x8xf32>
    %44 = arith.addf %42, %43 : vector<8x8xf32>
    %cst_14 = arith.constant 0xFF800000 : f32
    %45 = vector.broadcast %cst_14 : f32 to vector<8x8xf32>
    %46 = arith.select %36, %44, %45 : vector<8x8xi1>, vector<8x8xf32>
    %47 = vector.extract_strided_slice %31 {offsets = [0, 0], sizes = [8, 1], strides = [1, 1]} : vector<16x1xf32> to vector<8x1xf32>
    %48 = vector.extract_strided_slice %33 {offsets = [0, 0], sizes = [1, 8], strides = [1, 1]} : vector<1x16xf32> to vector<1x8xf32>
    %49 = vector.shape_cast %48 : vector<1x8xf32> to vector<1x8xf32>
    %50 = vector.broadcast %49 : vector<1x8xf32> to vector<8x8xf32>
    %51 = vector.broadcast %47 : vector<8x1xf32> to vector<8x8xf32>
    %52 = arith.addf %51, %50 : vector<8x8xf32>
    %53 = arith.addf %52, %46 : vector<8x8xf32>
    %54 = vector.extract_strided_slice %31 {offsets = [8, 0], sizes = [8, 1], strides = [1, 1]} : vector<16x1xf32> to vector<8x1xf32>
    %55 = vector.extract_strided_slice %33 {offsets = [0, 8], sizes = [1, 8], strides = [1, 1]} : vector<1x16xf32> to vector<1x8xf32>
    %56 = vector.shape_cast %55 : vector<1x8xf32> to vector<1x8xf32>
    %57 = vector.broadcast %56 : vector<1x8xf32> to vector<8x8xf32>
    %58 = vector.broadcast %54 : vector<8x1xf32> to vector<8x8xf32>
    %59 = arith.addf %58, %57 : vector<8x8xf32>
    %60 = arith.addf %59, %46 : vector<8x8xf32>
    %61 = tpu.concatenate %53, %60 in 0 : vector<8x8xf32>, vector<8x8xf32> -> vector<16x8xf32>
    %62 = tpu.iota {dimensions = array<i32: 1>} : vector<16x8xi32>
    %cst_15 = arith.constant dense<0xFF800000> : vector<16xf32>
    %63 = vector.multi_reduction <maximumf>, %61, %cst_15 [1] : vector<16x8xf32> to vector<16xf32>
    %64 = vector.shape_cast %63 : vector<16xf32> to vector<16x1xf32>
    %65 = vector.broadcast %64 : vector<16x1xf32> to vector<16x8xf32>
    %66 = arith.cmpf oeq, %61, %65 : vector<16x8xf32>
    %c8_i32 = arith.constant 8 : i32
    %67 = vector.broadcast %c8_i32 : i32 to vector<16x8xi32>
    %68 = arith.select %66, %62, %67 : vector<16x8xi1>, vector<16x8xi32>
    %cst_16 = arith.constant dense<2147483647> : vector<16xi32>
    %69 = vector.multi_reduction <minsi>, %68, %cst_16 [1] : vector<16x8xi32> to vector<16xi32>
    %70 = vector.shape_cast %69 : vector<16xi32> to vector<16x1xi32>
    %71 = vector.broadcast %70 : vector<16x1xi32> to vector<16x8xi32>
    %72 = arith.cmpi eq, %62, %71 : vector<16x8xi32>
    %73 = arith.extui %72 : vector<16x8xi1> to vector<16x8xi32>
    %74 = arith.sitofp %73 : vector<16x8xi32> to vector<16x8xf32>
    %c0_17 = arith.constant 0 : index
    %c0_18 = arith.constant 0 : index
    %75 = vector.load %arg3[%c0_17, %c0_18] : memref<16x8xf32, #tpu.memory_space<vmem>>, vector<16x8xf32>
    tpu.vector_store %arg3[%c0_17, %c0_18], %74 {strides = array<i32>} : memref<16x8xf32, #tpu.memory_space<vmem>>, vector<16x8xf32>,
    return
  }
}

</mosaic_0001>

<bundles_post_ra>
// kernel: pair_module.1
= control target key start
LH: loop header
LB: loop body
LE: loop exit
PB: predicated region body
PF: predicated region fallthrough
CT: control target
= control target key end

     0   :  { %8 = vsyncpa [#allocation3], 0  ;;  %s648_s0 = inlined_call_operand.vmem [shape: f32[16,128], index: 0, kind: input, shape index: {}]   ;;  %s649_s1 = inlined_call_operand.hbm [shape: f32[128,128], index: 1, kind: input, shape index: {}]   ;;  %s650_s2 = inlined_call_operand.vmem [shape: f32[8,128], index: 2, kind: input, shape index: {}]   ;;  %s651_s3 = inlined_call_operand.hbm [shape: f32[16,8], index: 3, kind: output, shape index: {}]  }
   0x1   :  { %9 = vsyncpa [#allocation4], 0  ;;  %s543_s12 = smov [#allocation2]   ;;  %s495_s16 = scalar_lea.hbm %s649_s1, 2048 }
   0x2   :  { %s17_s13 = sshll.u32 %s543_s12, 4  ;;  %p496_p0 = scmp.ne.s32.totalorder %s649_s1, %s495_s16  ;;  %s18_s13 = int_to_ptr.vmem [resolvable:$true] %s17_s13 }
   0x3   :  { %p499_p1 = scmp.lt.u32.totalorder %s495_s16, %s649_s1 }
   0x5   :  { %p501_p2 = pnand %p499_p1, %p496_p0 }
   0x7   :  { %504 = shalt.err (!%p501_p2)
}
   0x8   :  { %s505_s21 = scalar_lea.vmem %s18_s13, 2048  ;;  %p510_p4 = scmp.lt.s32.totalorder %s18_s13, %s18_s13 }
   0x9   :  { %p506_p3 = scmp.ne.s32.totalorder %s18_s13, %s505_s21  ;;  %p511_p5 = scmp.lt.s32.totalorder %s505_s21, %s505_s21 }
   0xb   :  { %p512_p6 = por %p511_p5, %p510_p4 }
   0xd   :  { %p513_p7 = pnand %p512_p6, %p506_p3 }
   0xf   :  { %516 = shalt.err (!%p513_p7)
}
  0x10   :  { %s544_s22 = smov 128   ;;  %s545_s23 = smov 8  }
  0x11   :  { %23 = dma.hbm_to_vmem [thread:$0]  %s649_s1, 2048, %s18_s13, [#allocation3], %s544_s22, %s544_s22, %s545_s23  }
  0x12   :  { %539 = dma.done.wait [#allocation3], 2048  }
  0x13   :  { %540 = vsyncadd [#allocation3], 4294965248  ;;  %v31_v0 = vld [vmem:[#allocation2] sm:$0xff]  ;;  %v32_v1 = vld [vmem:[#allocation2 + $0x8] sm:$0xff]  ;;  %s546_s4 = smov 64   ;;  %s547_s7 = smov 127   ;;  %v258_v45 = vlaneseq }
  0x14   :  { %v33_v2 = vld [vmem:[#allocation2 + $0x10] sm:$0xff]  ;;  %v432_v3 = vpack.c.bf16 %v32_v1, %v31_v0  ;;  %v34_v4 = vld [vmem:[#allocation2 + $0x18] sm:$0xff]  ;;  %v35_v6 = vld [vmem:[#allocation2 + $0x20] sm:$0xff]  ;;  %v548_v40 = vmov 0.0|0.0   ;;  %vm549_vm0 = vmmov 0   ;;  %v550_v42 = vmov 0.0  }
  0x15   :  { %v436_v5 = vpack.c.bf16 %v34_v4, %v33_v2  ;;  %v36_v7 = vld [vmem:[#allocation2 + $0x28] sm:$0xff]  ;;  %v29_v9 = vld [vmem:[%s648_s0] sm:$0xff]  ;;  %v37_v10 = vld [vmem:[#allocation2 + $0x30] sm:$0xff]  ;;  %464 = vmatprep.subr.bf16.mxu1 %v548_v40  ;;  %429 = vmatprep.mubr.msk.f32.mxu1 %vm549_vm0, %v550_v42  ;;  %v259_v46 = vshrl.u32 %v258_v45, 7  ;;  %v606_v47 = vand.u32 127, %v258_v45  ;;  %vm172_vm1 = vcmask 261120  }
  0x16   :  { %433 = vmatprep.subr.bf16.mxu0 %v432_v3  ;;  %v440_v8 = vpack.c.bf16 %v36_v7, %v35_v6  ;;  %v38_v11 = vld [vmem:[#allocation2 + $0x38] sm:$0xff]  ;;  %422 = vmatprep.mubr.f32.mxu0 %v29_v9  ;;  %v39_v13 = vld [vmem:[#allocation2 + $0x40] sm:$0xff]  ;;  %v40_v14 = vld [vmem:[#allocation2 + $0x48] sm:$0xff]  ;;  %vm294_vm4 = vcmask 64512   ;;  %s553_s14 = smov [#allocation5]  }
  0x17   :  { %435 = vmatpush3.bf16.msra.mxu0 %v432_v3  ;;  %v444_v12 = vpack.c.bf16 %v38_v11, %v37_v10  ;;  %v448_v15 = vpack.c.bf16 %v40_v14, %v39_v13  ;;  %v41_v16 = vld [vmem:[#allocation2 + $0x50] sm:$0xff]  ;;  %v42_v17 = vld [vmem:[#allocation2 + $0x58] sm:$0xff]  ;;  %v43_v19 = vld [vmem:[#allocation2 + $0x60] sm:$0xff]  ;;  %v263_v48 = vsub.s32 %v259_v46, %v606_v47  ;;  %vm262_vm2 = vcmp.le.s32.totalorder %v606_v47, %v259_v46  ;;  %s348_s15 = sshll.u32 %s553_s14, 4  ;;  %s349_s15 = int_to_ptr.vmem [resolvable:$true] %s348_s15 }
  0x18   :  { %437 = vmatprep.subr.bf16.mxu0 %v436_v5  ;;  %v452_v18 = vpack.c.bf16 %v42_v17, %v41_v16  ;;  %v44_v20 = vld [vmem:[#allocation2 + $0x68] sm:$0xff]  ;;  %v45_v22 = vld [vmem:[#allocation2 + $0x70] sm:$0xff]  ;;  %v46_v23 = vld [vmem:[#allocation2 + $0x78] sm:$0xff]  ;;  %s517_s16 = scalar_lea.vmem %s349_s15, 256  ;;  %p522_p9 = scmp.lt.s32.totalorder %s349_s15, %s349_s15 }
  0x19   :  { %v456_v21 = vpack.c.bf16 %v44_v20, %v43_v19  ;;  %v460_v24 = vpack.c.bf16 %v46_v23, %v45_v22  ;;  %v30_v25 = vld [vmem:[%s648_s0 + $0x8] sm:$0xff]  ;;  %v363_v26 = vld [vmem:[%s650_s2 + $0x2] ss:$0 sm:$0xff]  ;;  %v153_v27 = vld [vmem:[%s650_s2 + $0x3] sm:$0x1]  ;;  %s551_s0 = smov 96   ;;  %p518_p8 = scmp.ne.s32.totalorder %s349_s15, %s517_s16 }
  0x1a   :  { %159 = vrot.lane.b32.xlu1 %v363_v26, %s546_s4  ;;  %468 = vpush %v153_v27  ;;  %v360_v28 = vld [vmem:[%s650_s2] ss:$0 sm:$0xff]  ;;  %v264_v49 = vadd.s32 1, %v263_v48  ;;  %vm466_vm3 = vmpackc.low %vm172_vm1, %vm172_vm1  ;;  %v151_v1 = vld [vmem:[%s650_s2 + $0x1] sm:$0x1]  ;;  %s552_s2 = smov 120   ;;  %p523_p10 = scmp.lt.s32.totalorder %s517_s16, %s517_s16 }
  0x1b   :  { %439 = vmatpush3.bf16.msra.mxu0 %v436_v5 }
  0x1c   :  { %441 = vmatprep.subr.bf16.mxu0 %v440_v8  ;;  %v265_v50 = vcvt.s32.f32 %v264_v49  ;;  %p524_p11 = por %p523_p10, %p522_p9 }
  0x1e   :  { %271 = vrot.lane.b32.xlu1 %v153_v27, %s547_s7  ;;  %p525_p12 = pnand %p524_p11, %p518_p8 }
  0x1f   :  { %443 = vmatpush3.bf16.msra.mxu0 %v440_v8  ;;  %v280_v8 = vsub.s32 0, %v259_v46 }
  0x20   :  { %445 = vmatprep.subr.bf16.mxu0 %v444_v12 }
  0x23   :  { %447 = vmatpush3.bf16.msra.mxu0 %v444_v12 }
  0x24   :  { %449 = vmatprep.subr.bf16.mxu0 %v448_v15 }
  0x27   :  { %451 = vmatpush3.bf16.msra.mxu0 %v448_v15 }
  0x28   :  { %453 = vmatprep.subr.bf16.mxu0 %v452_v18 }
  0x2b   :  { %455 = vmatpush3.bf16.msra.mxu0 %v452_v18 }
  0x2c   :  { %457 = vmatprep.subr.bf16.mxu0 %v456_v21 }
  0x2f   :  { %459 = vmatpush3.bf16.msra.mxu0 %v456_v21 }
  0x30   :  { %461 = vmatprep.subr.bf16.mxu0 %v460_v24 }
  0x33   :  { %463 = vmatpush3.bf16.msra.mxu0 %v460_v24 }
  0x36   :  { %423 = vmatmul.mubr.f32.vlgmr.msra.gmra.mrb[0].mxu0 %v30_v25 }
  0x4b   :  { %s469_s10 = spop %468 }
  0x4c   :  { %v268_v51 = vstv %s469_s10 }
  0x4d   :  { %v270_v52 = vmul.f32 %v268_v51, %v265_v50 }
  0x8c   :  { %v160_v39 = vpop.permute.xlu1 %159 }
  0x90   :  { %v272_v41 = vpop.permute.xlu1 %271 }
  0x91   :  { %470 = vpush %v272_v41 }
  0xc2   :  { %s471_s11 = spop %470 }
  0xc3   :  { %v274_v55 = vstv %s471_s11 }
  0xc4   :  { %v276_v58 = vadd.f32 %v274_v55, %v270_v52 }
  0xc6   :  { %v277_v0 = vsel %vm262_vm2, %v276_v58, -inf }
 0x109   :  { %v424_v29 = vpop.f32.mrb[0].mxu0 }
 0x10a   :  { %v124_v30 = vadd.f32 %v424_v29, %v360_v28  ;;  %v118_v31 = vpop.f32.mrb[1].mxu0 }
 0x10b   :  { %v119_v32 = vadd.f32 %v360_v28, %v118_v31 }
 0x10c   :  { %v362_v33 = vmul.f32 -1.442695, %v124_v30 }
 0x10d   :  { %v361_v34 = vmul.f32 -1.442695, %v119_v32 }
 0x10e   :  { %483 = vpow2.f32 %v362_v33 }
 0x10f   :  { %485 = vpow2.f32 %v361_v34 }
 0x118   :  { %v484_v35 = vpop.eup %483 }
 0x119   :  { %v486_v36 = vpop.eup %485  ;;  %v136_v38 = vadd.f32 1.0, %v484_v35 }
 0x11a   :  { %v135_v37 = vadd.f32 1.0, %v486_v36 }
 0x11c   :  { %487 = vrcp.f32 %v135_v37 }
 0x11d   :  { %489 = vrcp.f32 %v136_v38 }
 0x11e   :  { %491 = vtanh.f32 %v119_v32 }
 0x11f   :  { %493 = vtanh.f32 %v124_v30 }
 0x126   :  { %v488_v43 = vpop.eup %487 }
 0x127   :  { %143 = vrot.lane.b32.xlu0 %v488_v43, %s551_s0  ;;  %v490_v44 = vpop.eup %489 }
 0x128   :  { %v492_v53 = vpop.eup %491 }
 0x129   :  { %v494_v59 = vpop.eup %493 }
 0x12b   :  { %145 = vrot.lane.b32.xlu0 %v490_v44, %s551_s0 }
 0x199   :  { %v144_v54 = vpop.permute.xlu0 %143 }
 0x19a   :  { %v149_v56 = vmul.f32 %v492_v53, %v144_v54 }
 0x19c   :  { %v162_v57 = vmul.f32 %v160_v39, %v149_v56 }
 0x19d   :  { %v146_v60 = vpop.permute.xlu0 %145 }
 0x19e   :  { %v150_v61 = vmul.f32 %v494_v59, %v146_v60  ;;  %166 = vrot.lane.b32.xlu1 %v162_v57, %s546_s4 }
 0x1a0   :  { %v163_v62 = vmul.f32 %v160_v39, %v150_v61  ;;  %v465_v63 = vpack.c.bf16 %v150_v61, %v149_v56 }
 0x1a2   :  { %168 = vrot.lane.b32.xlu0 %v163_v62, %s546_s4  ;;  %467 = vmatpush3.bf16.xpose.msk.msra.mxu1 %vm466_vm3, %v465_v63 }
 0x1a3   :  { %286 = vrot.lane.b32.xlu1 %v277_v0, %s545_s23 }
 0x1a9   :  { %430 = vmatmul.mubr.msk.f32.vlgmr.msra.gmra.mrb[0].mxu1 %vm172_vm1, %v151_v1 }
 0x210   :  { %v167_v2 = vpop.permute.xlu1 %166 }
 0x211   :  { %v173_v3 = vsel %vm172_vm1, %v167_v2, 0.0 }
 0x212   :  { %174 = vadd.xlane.f32.xlu1 %v173_v3 }
 0x214   :  { %v169_v4 = vpop.permute.xlu0 %168 }
 0x215   :  { %v176_v5 = vsel %vm172_vm1, %v169_v4, 0.0  ;;  %v287_v9 = vpop.permute.xlu1 %286 }
 0x216   :  { %177 = vadd.xlane.f32.xlu0 %v176_v5 }
 0x27c   :  { %v254_v6 = vpop.f32.mrb[0].mxu1 }
 0x27d   :  { %v431_v7 = vpop.f32.mrb[1].mxu1  ;;  %v281_v10 = vrot.slane %v254_v6, %v280_v8 }
 0x29f   :  { %v175_v11 = vpop.xlane.xlu1 %174 }
 0x2a0   :  { %v282_v12 = vadd.f32 %v281_v10, %v175_v11 }
 0x2a2   :  { %v283_v13 = vadd.f32 %v282_v12, %v277_v0 }
 0x2a3   :  { %v178_v14 = vpop.xlane.xlu0 %177 }
 0x2a4   :  { %v284_v15 = vadd.f32 %v281_v10, %v178_v14  ;;  %v295_v16 = vsel %vm294_vm4, %v283_v13, -inf }
 0x2a5   :  { %296 = vmax.xlane.f32.xlu1 %v295_v16 }
 0x2a6   :  { %v289_v17 = vadd.f32 %v287_v9, %v284_v15 }
 0x2a8   :  { %291 = vrot.lane.b32.xlu0 %v289_v17, %s552_s2 }
 0x31a   :  { %v292_v18 = vpop.permute.xlu0 %291 }
 0x31b   :  { %v298_v19 = vsel %vm294_vm4, %v292_v18, -inf }
 0x31c   :  { %299 = vmax.xlane.f32.xlu1 %v298_v19 }
 0x332   :  { %v297_v20 = vpop.xlane.xlu1 %296 }
 0x333   :  { %vm301_vm5 = vcmp.eq.f32.partialorder %v283_v13, %v297_v20 }
 0x334   :  { %v303_v21 = vsel %vm301_vm5, %v606_v47, 8 }
 0x335   :  { %v305_v22 = vsel %vm294_vm4, %v303_v21, 2147483647 }
 0x336   :  { %v307_v23 = vshra.s32 %v305_v22, 16  ;;  %v306_v30 = vand.u32 65535, %v305_v22 }
 0x338   :  { %v309_v24 = vcvt.s32.f32 %v307_v23  ;;  %v308_v32 = vcvt.s32.f32 %v306_v30 }
 0x33a   :  { %310 = vmin.xlane.f32.xlu1 %v309_v24 }
 0x3a9   :  { %v300_v25 = vpop.xlane.xlu1 %299 }
 0x3aa   :  { %vm302_vm6 = vcmp.eq.f32.partialorder %v292_v18, %v300_v25 }
 0x3ab   :  { %v304_v26 = vsel %vm302_vm6, %v606_v47, 8 }
 0x3ac   :  { %v320_v27 = vsel %vm294_vm4, %v304_v26, 2147483647 }
 0x3ad   :  { %v322_v28 = vshra.s32 %v320_v27, 16  ;;  %v321_v34 = vand.u32 65535, %v320_v27 }
 0x3af   :  { %v324_v29 = vcvt.s32.f32 %v322_v28  ;;  %v323_v36 = vcvt.s32.f32 %v321_v34 }
 0x3b1   :  { %325 = vmin.xlane.f32.xlu1 %v324_v29 }
 0x3c7   :  { %v311_v31 = vpop.xlane.xlu1 %310 }
 0x3c8   :  { %vm312_vm7 = vcmp.eq.f32.partialorder %v309_v24, %v311_v31  ;;  %v317_v38 = vcvt.f32.s32 %v311_v31 }
 0x3c9   :  { %v313_v33 = vsel %vm312_vm7, %v308_v32, inf }
 0x3ca   :  { %314 = vmin.xlane.f32.xlu0 %v313_v33  ;;  %v318_v40 = vshll.u32 %v317_v38, 16 }
 0x43e   :  { %v326_v35 = vpop.xlane.xlu1 %325 }
 0x43f   :  { %vm327_vm8 = vcmp.eq.f32.partialorder %v324_v29, %v326_v35  ;;  %v332_v45 = vcvt.f32.s32 %v326_v35 }
 0x440   :  { %v328_v37 = vsel %vm327_vm8, %v323_v36, inf }
 0x441   :  { %329 = vmin.xlane.f32.xlu1 %v328_v37  ;;  %v333_v48 = vshll.u32 %v332_v45, 16 }
 0x457   :  { %v315_v39 = vpop.xlane.xlu0 %314 }
 0x458   :  { %v316_v41 = vcvt.f32.s32 %v315_v39 }
 0x45a   :  { %v319_v43 = vadd.s32 %v318_v40, %v316_v41 }
 0x45c   :  { %vm335_vm9 = vcmp.eq.s32.totalorder %v606_v47, %v319_v43 }
 0x45d   :  { %v367_v44 = vsel %vm335_vm9, 1.0, %v550_v42 }
 0x45e   :  { %341 = vst.msk [vmem:[#allocation5] sm:$0xff] %vm294_vm4, %v367_v44 }
 0x4ce   :  { %v330_v46 = vpop.xlane.xlu1 %329 }
 0x4cf   :  { %v331_v49 = vcvt.f32.s32 %v330_v46 }
 0x4d1   :  { %v334_v50 = vadd.s32 %v333_v48, %v331_v49 }
 0x4d3   :  { %vm336_vm10 = vcmp.eq.s32.totalorder %v606_v47, %v334_v50 }
 0x4d4   :  { %v368_v51 = vsel %vm336_vm10, 1.0, %v550_v42 }
 0x4d5   :  { %342 = vst.msk [vmem:[#allocation5 + $0x8] sm:$0xff] %vm294_vm4, %v368_v51 }
 0x4d6   :  { %528 = shalt.err (!%p525_p12)
}
 0x4d7   :  { %s529_s19 = scalar_lea.hbm %s651_s3, 256 }
 0x4d8   :  { %p530_p13 = scmp.ne.s32.totalorder %s651_s3, %s529_s19  ;;  %p533_p0 = scmp.lt.u32.totalorder %s529_s19, %s651_s3 }
 0x4da   :  { %p535_p1 = pnand %p533_p0, %p530_p13 }
 0x4dc   :  { %538 = shalt.err (!%p535_p1)
}
 0x4dd   :  { %354 = dma.vmem_to_hbm [thread:$0]  %s349_s15, 256, %s651_s3, [#allocation4], %s544_s22, %s544_s22, %s545_s23  }
 0x4de   :  { %541 = dma.done.wait [#allocation4], 256  }
 0x4df   :  { %542 = vsyncadd [#allocation4], 4294967040 }
 0x4e0   :  { %358 = vsyncpa [#allocation3], 1 }
 0x4e1   :  { %359 = vsyncpa [#allocation4], 1 }

</bundles_post_ra>
